<compile_context>
chip_gen: v6e
topology: v6e:2x2x1
jax: 0.10.0
libtpu: 0.0.40
codegen_flags: <defaults>
</compile_context>

<pallas_src>
import functools

import jax
import jax.numpy as jnp
from jax.experimental import pallas as pl
from jax.experimental.pallas import tpu as pltpu

LRELU_SLOPE = 0.2

# MLP layer sizes from the module's __init__.
DIMS = (8, 64, 16, 32, 8)
NUM_LAYERS = len(DIMS) - 1

# Packed parameter slab layout (single grid-invariant kernel input):
#   rows [W_ROW_OFFS[i], W_ROW_OFFS[i]+fan_in) x cols [0, fan_out): layer-i weight (in, out)
#   row   B_ROW_OFFS[i]                        x cols [0, fan_out): layer-i bias
# Every band start is a multiple of 8 (sublane aligned) so all in-kernel slices
# are zero-cost static views.
_w_offs = [0]
for _fin in DIMS[:-1]:
    _w_offs.append(_w_offs[-1] + _fin)
W_ROW_OFFS = tuple(_w_offs[:-1])                                 # (0, 8, 72, 88)
_b_base = ((_w_offs[-1] + 7) // 8) * 8                           # 120
B_ROW_OFFS = tuple(_b_base + 8 * i for i in range(NUM_LAYERS))   # (120, 128, 136, 144)
SLAB_ROWS = ((B_ROW_OFFS[-1] + 1 + 7) // 8) * 8                  # 152 (multiple of 8)
SLAB_COLS = 128                                                  # >= max fan_out, lane aligned


def mlp_kernel(x_ref, p_ref, o_ref, *, mxu_bf16):
    """Whole encoder for one (bm, 8) batch tile, fully resident in VMEM.

    x_ref: (bm, 8)        activations, natural batch-major layout
    p_ref: (152, 128)     packed weights (in, out) + biases, grid-invariant
    o_ref: (bm, 8)        output latent
    """
    h = x_ref[...]                                                # (bm, 8) f32
    for li in range(NUM_LAYERS):                                  # unrolled at trace time
        fin, fout = DIMS[li], DIMS[li + 1]
        r0 = W_ROW_OFFS[li]
        w = p_ref[r0:r0 + fin, 0:fout]                            # (fin, fout), static slice
        b = p_ref[B_ROW_OFFS[li]:B_ROW_OFFS[li] + 1, 0:fout]      # (1, fout)
        if mxu_bf16:
            acc = jnp.dot(h.astype(jnp.bfloat16), w.astype(jnp.bfloat16),
                          preferred_element_type=jnp.float32)     # bf16 MXU, f32 acc
        else:
            acc = jnp.dot(h, w, preferred_element_type=jnp.float32)
        h = acc + b                                               # bias broadcast-add (f32)
        if li < NUM_LAYERS - 1:
            h = jnp.where(h > 0, h, LRELU_SLOPE * h)              # LeakyReLU(0.2), f32 VPU
    o_ref[...] = h.astype(o_ref.dtype)


def pack_params(params):
    """Pack per-layer (W (in, out), b (out,)) into one (152, 128) f32 slab.

    Call once at parameter-load time (NOT inside the per-forward jit).
    PyTorch nn.Linear stores weight as (out, in): pass `weight.T` here.
    """
    slab = jnp.zeros((SLAB_ROWS, SLAB_COLS), jnp.float32)
    for li, (w, b) in enumerate(params):
        fin, fout = DIMS[li], DIMS[li + 1]
        assert w.shape == (fin, fout) and b.shape == (fout,)
        slab = slab.at[W_ROW_OFFS[li]:W_ROW_OFFS[li] + fin, 0:fout].set(
            w.astype(jnp.float32))
        slab = slab.at[B_ROW_OFFS[li], 0:fout].set(b.astype(jnp.float32))
    return slab


@functools.partial(jax.jit, static_argnames=("bm", "mxu_bf16"))
def _encoder_pallas(xp, slab, *, bm, mxu_bf16):
    Bp = xp.shape[0]
    n_steps = Bp // bm
    flops = 2 * Bp * sum(a * b for a, b in zip(DIMS[:-1], DIMS[1:]))   # 2*Bp*2816
    bytes_accessed = 4 * (xp.size + Bp * DIMS[-1] + slab.size)

    return pl.pallas_call(
        functools.partial(mlp_kernel, mxu_bf16=mxu_bf16),
        out_shape=jax.ShapeDtypeStruct((Bp, DIMS[-1]), jnp.float32),
        grid_spec=pltpu.PrefetchScalarGridSpec(
            num_scalar_prefetch=0,
            grid=(n_steps,),
            in_specs=[
                pl.BlockSpec((bm, DIMS[0]), lambda i: (i, 0)),            # x batch tile
                pl.BlockSpec((SLAB_ROWS, SLAB_COLS), lambda i: (0, 0)),   # params (grid-invariant)
            ],
            out_specs=pl.BlockSpec((bm, DIMS[-1]), lambda i: (i, 0)),
        ),
        compiler_params=pltpu.CompilerParams(
            # "parallel" lets the batch-tile axis shard across TensorCores on
            # multi-TC parts (v7x).  TODO(synk): sweep pltpu.CORE_PARALLEL on v7x.
            dimension_semantics=("parallel",),
            vmem_limit_bytes=32 * 1024 * 1024,
        ),
        cost_estimate=pl.CostEstimate(
            flops=flops, transcendentals=0, bytes_accessed=bytes_accessed),
    )(xp, slab)


def _round_up(n, m):
    return ((n + m - 1) // m) * m


def latent_encoder_forward(x, slab, *, bm=4096, mxu_bf16=False):
    """x: (B, 8) natural layout. slab: output of pack_params(). Returns (B, 8).

    No wrapper-side transposes and no per-call packing; the only host-side work
    is (optional) zero-padding of the batch to a multiple of the batch tile.
    """
    B, d_in = x.shape
    assert d_in == DIMS[0]

    # Batch tile: multiple of 128 (lane-aligned, no ragged tiles), capped by the
    # padded batch, and shrunk so there are >=2 grid steps whenever the batch
    # allows it (feeds both v7x TensorCores; v5e/v6e are single-TC and don't care).
    b128 = _round_up(B, 128)
    bm = max(128, (min(bm, b128) // 128) * 128)
    if b128 >= 256:
        bm = min(bm, max(128, (b128 // 2 // 128) * 128))
    Bp = _round_up(B, bm)

    xp = x.astype(jnp.float32)
    if Bp != B:
        xp = jnp.pad(xp, ((0, Bp - B), (0, 0)))

    out = _encoder_pallas(xp, slab, bm=bm, mxu_bf16=mxu_bf16)
    if Bp != B:
        out = out[:B]
    return out.astype(x.dtype)


def init_params(key):
    """Deterministic init mimicking PyTorch nn.Linear default (U[-1/sqrt(fan_in), +])."""
    params = []
    for i in range(NUM_LAYERS):
        fan_in, fan_out = DIMS[i], DIMS[i + 1]
        key, kw, kb = jax.random.split(key, 3)
        bound = 1.0 / (fan_in ** 0.5)
        w = jax.random.uniform(kw, (fan_in, fan_out), jnp.float32, -bound, bound)
        b = jax.random.uniform(kb, (fan_out,), jnp.float32, -bound, bound)
        params.append((w, b))
    return params


def reference_forward(x, params):
    h = x.astype(jnp.float32)
    for i, (w, b) in enumerate(params):
        h = h @ w + b
        if i < len(params) - 1:
            h = jnp.where(h > 0, h, LRELU_SLOPE * h)
    return h


if __name__ == "__main__":
    key = jax.random.PRNGKey(0)
    kx, kp = jax.random.split(key)

    # Small demo batch; tile auto-shrinks to bm=128 -> 2 "parallel" grid steps.
    B = 256
    x = jax.random.normal(kx, (B, DIMS[0]), jnp.float32)
    params = init_params(kp)
    slab = pack_params(params)            # packed ONCE, outside the jitted forward

    # f32-operand path. Tolerance accommodates the MXU's bf16-based f32 passes on
    # both the kernel and the XLA reference path; real layout/orientation bugs
    # would show up as O(1) errors.
    out = jax.block_until_ready(latent_encoder_forward(x, slab))
    ref = reference_forward(x, params)
    assert out.shape == (B, DIMS[-1])
    assert jnp.allclose(out, ref, atol=2e-2, rtol=2e-2), "f32 path mismatch vs reference"

    # Ragged batch exercises the pad-to-tile path (reuses the same executable).
    B2 = 200
    out2 = jax.block_until_ready(latent_encoder_forward(x[:B2], slab))
    assert out2.shape == (B2, DIMS[-1])
    assert jnp.allclose(out2, ref[:B2], atol=2e-2, rtol=2e-2), "padded path mismatch"

    # Optional bf16-operand MXU fast path (v6e/v7x); f32 accumulation + f32 LeakyReLU.
    out_bf16 = jax.block_until_ready(latent_encoder_forward(x, slab, mxu_bf16=True))
    assert jnp.allclose(out_bf16, ref, atol=5e-2, rtol=5e-2), "bf16 path mismatch"

    print("KERNEL_OK")
</pallas_src>

<mosaic_0001>
module attributes {stable_mosaic.version = 11 : i64} {
  func.func @mlp_kernel(%arg0: i32, %arg1: memref<128x8xf32, #tpu.memory_space<vmem>>, %arg2: memref<152x128xf32, #tpu.memory_space<vmem>>, %arg3: memref<128x8xf32, #tpu.memory_space<vmem>>) attributes {dimension_semantics = [#tpu.dimension_semantics<parallel>], iteration_bounds = array<i64: 2>, scalar_prefetch = 0 : i64, scratch_operands = 0 : i64, tpu.core_type = #tpu.core_type<tc>, window_params = [{transform_indices = @transform_0, window_bounds = array<i64: 128, 8>}, {pipeline_mode = #tpu.pipeline_mode<synchronous>, transform_indices = @transform_1, window_bounds = array<i64: 152, 128>}, {transform_indices = @transform_2, window_bounds = array<i64: 128, 8>}]} {
    %c0 = arith.constant 0 : index
    %c0_0 = arith.constant 0 : index
    %0 = vector.load %arg1[%c0, %c0_0] : memref<128x8xf32, #tpu.memory_space<vmem>>, vector<128x8xf32>
    %c0_1 = arith.constant 0 : index
    %c0_2 = arith.constant 0 : index
    %1 = vector.load %arg2[%c0_1, %c0_2] : memref<152x128xf32, #tpu.memory_space<vmem>>, vector<8x64xf32>
    %c120 = arith.constant 120 : index
    %c0_3 = arith.constant 0 : index
    %2 = vector.load %arg2[%c120, %c0_3] : memref<152x128xf32, #tpu.memory_space<vmem>>, vector<1x64xf32>
    %cst = arith.constant dense<0.000000e+00> : vector<128x64xf32>
    %3 = tpu.matmul %0, %1, %cst {dimension_numbers = #tpu.dot_dimension_numbers<[1], [0], [0], [1], [0, 0, 1, 1], [], []>} : vector<128x8xf32>, vector<8x64xf32>, vector<128x64xf32> -> vector<128x64xf32>
    %4 = vector.broadcast %2 : vector<1x64xf32> to vector<128x64xf32>
    %5 = arith.addf %3, %4 : vector<128x64xf32>
    %cst_4 = arith.constant 0.000000e+00 : f32
    %6 = vector.broadcast %cst_4 : f32 to vector<128x64xf32>
    %7 = arith.cmpf ogt, %5, %6 : vector<128x64xf32>
    %cst_5 = arith.constant 2.000000e-01 : f32
    %8 = vector.broadcast %cst_5 : f32 to vector<128x64xf32>
    %9 = arith.mulf %8, %5 : vector<128x64xf32>
    %10 = arith.select %7, %5, %9 : vector<128x64xi1>, vector<128x64xf32>
    %c8 = arith.constant 8 : index
    %c0_6 = arith.constant 0 : index
    %11 = vector.load %arg2[%c8, %c0_6] : memref<152x128xf32, #tpu.memory_space<vmem>>, vector<64x16xf32>
    %c128 = arith.constant 128 : index
    %c0_7 = arith.constant 0 : index
    %12 = vector.load %arg2[%c128, %c0_7] : memref<152x128xf32, #tpu.memory_space<vmem>>, vector<1x16xf32>
    %cst_8 = arith.constant dense<0.000000e+00> : vector<128x16xf32>
    %13 = tpu.matmul %10, %11, %cst_8 {dimension_numbers = #tpu.dot_dimension_numbers<[1], [0], [0], [1], [0, 0, 1, 1], [], []>} : vector<128x64xf32>, vector<64x16xf32>, vector<128x16xf32> -> vector<128x16xf32>
    %14 = vector.broadcast %12 : vector<1x16xf32> to vector<128x16xf32>
    %15 = arith.addf %13, %14 : vector<128x16xf32>
    %cst_9 = arith.constant 0.000000e+00 : f32
    %16 = vector.broadcast %cst_9 : f32 to vector<128x16xf32>
    %17 = arith.cmpf ogt, %15, %16 : vector<128x16xf32>
    %cst_10 = arith.constant 2.000000e-01 : f32
    %18 = vector.broadcast %cst_10 : f32 to vector<128x16xf32>
    %19 = arith.mulf %18, %15 : vector<128x16xf32>
    %20 = arith.select %17, %15, %19 : vector<128x16xi1>, vector<128x16xf32>
    %c72 = arith.constant 72 : index
    %c0_11 = arith.constant 0 : index
    %21 = vector.load %arg2[%c72, %c0_11] : memref<152x128xf32, #tpu.memory_space<vmem>>, vector<16x32xf32>
    %c136 = arith.constant 136 : index
    %c0_12 = arith.constant 0 : index
    %22 = vector.load %arg2[%c136, %c0_12] : memref<152x128xf32, #tpu.memory_space<vmem>>, vector<1x32xf32>
    %cst_13 = arith.constant dense<0.000000e+00> : vector<128x32xf32>
    %23 = tpu.matmul %20, %21, %cst_13 {dimension_numbers = #tpu.dot_dimension_numbers<[1], [0], [0], [1], [0, 0, 1, 1], [], []>} : vector<128x16xf32>, vector<16x32xf32>, vector<128x32xf32> -> vector<128x32xf32>
    %24 = vector.broadcast %22 : vector<1x32xf32> to vector<128x32xf32>
    %25 = arith.addf %23, %24 : vector<128x32xf32>
    %cst_14 = arith.constant 0.000000e+00 : f32
    %26 = vector.broadcast %cst_14 : f32 to vector<128x32xf32>
    %27 = arith.cmpf ogt, %25, %26 : vector<128x32xf32>
    %cst_15 = arith.constant 2.000000e-01 : f32
    %28 = vector.broadcast %cst_15 : f32 to vector<128x32xf32>
    %29 = arith.mulf %28, %25 : vector<128x32xf32>
    %30 = arith.select %27, %25, %29 : vector<128x32xi1>, vector<128x32xf32>
    %c88 = arith.constant 88 : index
    %c0_16 = arith.constant 0 : index
    %31 = vector.load %arg2[%c88, %c0_16] : memref<152x128xf32, #tpu.memory_space<vmem>>, vector<32x8xf32>
    %c144 = arith.constant 144 : index
    %c0_17 = arith.constant 0 : index
    %32 = vector.load %arg2[%c144, %c0_17] : memref<152x128xf32, #tpu.memory_space<vmem>>, vector<1x8xf32>
    %cst_18 = arith.constant dense<0.000000e+00> : vector<128x8xf32>
    %33 = tpu.matmul %30, %31, %cst_18 {dimension_numbers = #tpu.dot_dimension_numbers<[1], [0], [0], [1], [0, 0, 1, 1], [], []>} : vector<128x32xf32>, vector<32x8xf32>, vector<128x8xf32> -> vector<128x8xf32>
    %34 = vector.broadcast %32 : vector<1x8xf32> to vector<128x8xf32>
    %35 = arith.addf %33, %34 : vector<128x8xf32>
    %c0_19 = arith.constant 0 : index
    %c0_20 = arith.constant 0 : index
    %36 = vector.load %arg3[%c0_19, %c0_20] : memref<128x8xf32, #tpu.memory_space<vmem>>, vector<128x8xf32>
    tpu.vector_store %arg3[%c0_19, %c0_20], %35 {strides = array<i32>} : memref<128x8xf32, #tpu.memory_space<vmem>>, vector<128x8xf32>,
    return
  }
  func.func @transform_0(%arg0: i32) -> (i32, i32) {
    %c0_i32 = arith.constant 0 : i32
    %c0_i32_0 = arith.constant 0 : i32
    return %arg0, %c0_i32 : i32, i32
  }
  func.func @transform_1(%arg0: i32) -> (i32, i32) {
    %c0_i32 = arith.constant 0 : i32
    %c0_i32_0 = arith.constant 0 : i32
    %c0_i32_1 = arith.constant 0 : i32
    return %c0_i32, %c0_i32_0 : i32, i32
  }
  func.func @transform_2(%arg0: i32) -> (i32, i32) {
    %c0_i32 = arith.constant 0 : i32
    %c0_i32_0 = arith.constant 0 : i32
    return %arg0, %c0_i32 : i32, i32
  }
}

</mosaic_0001>

<bundles_post_ra>
// kernel: _encoder_pallas.1
= control target key start
LH: loop header
LB: loop body
LE: loop exit
PB: predicated region body
PF: predicated region fallthrough
CT: control target
= control target key end

     0   :  { %s1521_s9 = smov 0   ;;  %s1772_s0 = inlined_call_operand.vmem [shape: f32[256,8], index: 0, kind: input, shape index: {}]   ;;  %s1773_s1 = inlined_call_operand.vmem [shape: f32[152,128], index: 1, kind: input, shape index: {}]   ;;  %s1774_s2 = inlined_call_operand.vmem [shape: f32[256,8], index: 2, kind: output, shape index: {}]  }
   0x1 LB: > { %s1190_s10 = sadd.s32 4294967295, %s1504_s9   ;;  %p1194_p0 = scmp.ge.s32.totalorder %s1504_s9, 1  ;;  %s1504_s9 = sphi %s1521_s9, %s12_s9  }
   0x2   : > { %p113_p1 = scmp.lt.s32.totalorder %s1504_s9, 3 }
   0x4   : > { %p114_p2 = pnand %p1194_p0, %p113_p1 }
   0x5   : > { %s1195_s13 = sshll.u32 (!%p114_p2), %s1190_s10, 4 }
   0x6   : > { %117 = sbr.rel (%p114_p2) target bundleno = 846 (0x34e), region = 28  ;;  %p136_p3 = scmp.lt.s32.totalorder (!%p114_p2), %s1195_s13, 31 }
   0xb   : > { %v163_v0 = vld [vmem:[%s1773_s1] sm:$0xff]  ;;  %v417_v2 = vld [vmem:[%s1773_s1 + $0x38] sm:$0xff]  ;;  %s1776_s13 = smov (!%p136_p3, %s1195_s13), 31  ;;  %v416_v3 = vld [vmem:[%s1773_s1 + $0x30] sm:$0xff]  ;;  %vm169_vm0 = vcmask 64512   ;;  %vm424_vm1 = vcmask 523264  }
   0xc   : > { %v418_v1 = vld [vmem:[%s1773_s1 + $0x40] sm:$0xff]  ;;  %1348 = vmatprep.subr.mxu0 %v163_v0  ;;  %s1196_s20 = sshll.u32 %s1776_s13, 3  ;;  %v415_v4 = vld [vmem:[%s1773_s1 + $0x28] sm:$0xff]  ;;  %v413_v11 = vld [vmem:[%s1773_s1 + $0x18] sm:$0xff] }
   0xd   : > { %1474 = vmatprep.subr.mxu1 %v418_v1  ;;  %1349 = vmatpush3.msra.mxu0 %v163_v0  ;;  %s1549_s23 = scalar_lea.vmem %s1772_s0, %s1196_s20  ;;  %v414_v8 = vld [vmem:[%s1773_s1 + $0x20] sm:$0xff]  ;;  %v412_v23 = vld [vmem:[%s1773_s1 + $0x10] sm:$0xff]  ;;  %v411_v24 = vld [vmem:[%s1773_s1 + $0x8] sm:$0xff]  ;;  %s1735_s3 = scalar_lea.vmem %s1774_s2, %s1196_s20 }
   0xe   : > { %1482 = vmatpush3.msra.mxu1 %v418_v1  ;;  %1374 = vmatprep.subr.mxu0 %v418_v1  ;;  %v147_v5 = vld [vmem:[%s1549_s23] sm:$0xff]  ;;  %v148_v6 = vld [vmem:[%s1549_s23 + $0x8] sm:$0xff]  ;;  %v149_v7 = vld [vmem:[%s1549_s23 + $0x10] sm:$0xff] }
   0xf   : > { %1475 = vmatprep.subr.mxu1 %v417_v2  ;;  %1350 = vmatprep.mubr.msk.f32.mxu0 %vm169_vm0, %v147_v5  ;;  %v150_v9 = vld [vmem:[%s1549_s23 + $0x18] sm:$0xff]  ;;  %v151_v10 = vld [vmem:[%s1549_s23 + $0x20] sm:$0xff]  ;;  %v152_v12 = vld [vmem:[%s1549_s23 + $0x28] sm:$0xff] }
  0x10   : > { %1483 = vmatpush3.msra.mxu1 %v417_v2  ;;  %1351 = vmatmul.mubr.msk.f32.vlgmr.msra.gmra.mxu0 %vm169_vm0, %v148_v6  ;;  %v153_v13 = vld [vmem:[%s1549_s23 + $0x30] sm:$0xff]  ;;  %v154_v14 = vld [vmem:[%s1549_s23 + $0x38] sm:$0xff]  ;;  %v155_v15 = vld [vmem:[%s1549_s23 + $0x40] sm:$0xff] }
  0x11   : > { %1476 = vmatprep.subr.mxu1 %v416_v3  ;;  %1353 = vmatprep.mubr.msk.f32.mxu0 %vm169_vm0, %v149_v7  ;;  %v156_v16 = vld [vmem:[%s1549_s23 + $0x48] sm:$0xff]  ;;  %v157_v17 = vld [vmem:[%s1549_s23 + $0x50] sm:$0xff]  ;;  %v158_v18 = vld [vmem:[%s1549_s23 + $0x58] sm:$0xff] }
  0x12   : > { %1484 = vmatpush3.msra.mxu1 %v416_v3  ;;  %1375 = vmatpush3.msra.mxu0 %v418_v1  ;;  %v159_v19 = vld [vmem:[%s1549_s23 + $0x60] sm:$0xff]  ;;  %v160_v20 = vld [vmem:[%s1549_s23 + $0x68] sm:$0xff]  ;;  %v161_v21 = vld [vmem:[%s1549_s23 + $0x70] sm:$0xff] }
  0x13   : > { %1477 = vmatprep.subr.mxu1 %v415_v4  ;;  %1376 = vmatprep.subr.mxu0 %v417_v2  ;;  %v162_v22 = vld [vmem:[%s1549_s23 + $0x78] sm:$0xff] }
  0x14   : > { %1485 = vmatpush3.msra.mxu1 %v415_v4  ;;  %1377 = vmatpush3.msra.mxu0 %v417_v2  ;;  %v1601_v25 = vld [vmem:[%s1773_s1 + $0x78] ss:$0 sm:$0xff] }
  0x15   : > { %1478 = vmatprep.subr.mxu1 %v414_v8  ;;  %1354 = vmatmul.mubr.msk.f32.gmra.mxu0 %vm169_vm0, %v150_v9 }
  0x16   : > { %1486 = vmatpush3.msra.mxu1 %v414_v8  ;;  %1378 = vmatprep.subr.mxu0 %v416_v3 }
  0x17   : > { %1479 = vmatprep.subr.mxu1 %v413_v11  ;;  %1356 = vmatprep.mubr.msk.f32.mxu0 %vm169_vm0, %v151_v10 }
  0x18   : > { %1379 = vmatpush3.msra.mxu0 %v416_v3  ;;  %1487 = vmatpush3.msra.mxu1 %v413_v11 }
  0x19   : > { %1380 = vmatprep.subr.mxu0 %v415_v4  ;;  %1357 = vmatmul.mubr.msk.f32.gmra.mxu0 %vm169_vm0, %v152_v12 }
  0x1a   : > { %1381 = vmatpush3.msra.mxu0 %v415_v4  ;;  %1359 = vmatprep.mubr.msk.f32.mxu0 %vm169_vm0, %v153_v13 }
  0x1b   : > { %1382 = vmatprep.subr.mxu0 %v414_v8  ;;  %1480 = vmatprep.subr.mxu1 %v412_v23 }
  0x1c   : > { %1383 = vmatpush3.msra.mxu0 %v414_v8  ;;  %1488 = vmatpush3.msra.mxu1 %v412_v23 }
  0x1d   : > { %1384 = vmatprep.subr.mxu0 %v413_v11  ;;  %1360 = vmatmul.mubr.msk.f32.gmra.mxu0 %vm169_vm0, %v154_v14 }
  0x1e   : > { %1385 = vmatpush3.msra.mxu0 %v413_v11  ;;  %1362 = vmatprep.mubr.msk.f32.mxu0 %vm169_vm0, %v155_v15 }
  0x1f   : > { %1386 = vmatprep.subr.mxu0 %v412_v23  ;;  %1481 = vmatprep.subr.mxu1 %v411_v24 }
  0x20   : > { %1387 = vmatpush3.msra.mxu0 %v412_v23  ;;  %1489 = vmatpush3.msra.mxu1 %v411_v24 }
  0x21   : > { %1363 = vmatmul.mubr.msk.f32.gmra.mxu0 %vm169_vm0, %v156_v16  ;;  %1388 = vmatprep.subr.mxu0 %v411_v24 }
  0x22   : > { %1365 = vmatprep.mubr.msk.f32.mxu0 %vm169_vm0, %v157_v17  ;;  %1389 = vmatpush3.msra.mxu0 %v411_v24 }
  0x25   : > { %1366 = vmatmul.mubr.msk.f32.gmra.mxu0 %vm169_vm0, %v158_v18 }
  0x26   : > { %1368 = vmatprep.mubr.msk.f32.mxu0 %vm169_vm0, %v159_v19 }
  0x29   : > { %1369 = vmatmul.mubr.msk.f32.gmra.mxu0 %vm169_vm0, %v160_v20 }
  0x2a   : > { %1371 = vmatprep.mubr.msk.f32.mxu0 %vm169_vm0, %v161_v21 }
  0x2d   : > { %1372 = vmatmul.mubr.msk.f32.gmra.mxu0 %vm169_vm0, %v162_v22 }
  0xd0   : > { %v1352_v26 = vpop.f32.mrf.mxu0 }
  0xd1   : > { %v290_v27 = vadd.f32 %v1352_v26, %v1601_v25 }
  0xd2   : > { %v284_v28 = vpop.f32.mrf.mxu0 }
  0xd3   : > { %v285_v29 = vadd.f32 %v1601_v25, %v284_v28  ;;  %v380_v30 = vmul.f32 0.2, %v290_v27  ;;  %vm364_vm2 = vcmp.gt.f32.partialorder %v290_v27, 0.0  ;;  %v918_v28 = vld [vmem:[%s1773_s1 + $0x70] sm:$0xff] }
  0xd4   : > { %1442 = vmatprep.subr.mxu1 %v918_v28 }
  0xd5   : > { %v1355_v31 = vpop.f32.mrf.mxu0  ;;  %vm363_vm3 = vcmp.gt.f32.partialorder %v285_v29, 0.0  ;;  %v379_v32 = vmul.f32 0.2, %v285_v29  ;;  %v396_v37 = vsel %vm364_vm2, %v290_v27, %v380_v30  ;;  %v666_v27 = vld [vmem:[%s1773_s1 + $0x48] sm:$0xff]  ;;  %v916_v30 = vld [vmem:[%s1773_s1 + $0x60] sm:$0xff] }
  0xd6   : > { %v300_v33 = vadd.f32 %v1355_v31, %v1601_v25  ;;  %v1653_v31 = vld [vmem:[%s1773_s1 + $0x80] ss:$0 sm:$0xff] }
  0xd7   : > { %v294_v34 = vpop.f32.mrf.mxu0  ;;  %v395_v36 = vsel %vm363_vm3, %v285_v29, %v379_v32  ;;  %v917_v29 = vld [vmem:[%s1773_s1 + $0x68] sm:$0xff] }
  0xd8   : > { %v295_v35 = vadd.f32 %v1601_v25, %v294_v34  ;;  %v382_v38 = vmul.f32 0.2, %v300_v33  ;;  %1390 = vmatprep.mubr.msk.f32.mxu0 %vm424_vm1, %v395_v36  ;;  %vm366_vm4 = vcmp.gt.f32.partialorder %v300_v33, 0.0 }
  0xd9   : > { %v1358_v39 = vpop.f32.mrf.mxu0  ;;  %1391 = vmatmul.mubr.msk.f32.vlgmr.msra.gmra.mxu0 %vm424_vm1, %v396_v37 }
  0xda   : > { %v310_v40 = vadd.f32 %v1358_v39, %v1601_v25  ;;  %vm365_vm5 = vcmp.gt.f32.partialorder %v295_v35, 0.0  ;;  %v381_v41 = vmul.f32 0.2, %v295_v35  ;;  %v398_v47 = vsel %vm366_vm4, %v300_v33, %v382_v38 }
  0xdb   : > { %v304_v42 = vpop.f32.mrf.mxu0 }
  0xdc   : > { %v305_v43 = vadd.f32 %v1601_v25, %v304_v42  ;;  %v397_v44 = vsel %vm365_vm5, %v295_v35, %v381_v41  ;;  %v384_v45 = vmul.f32 0.2, %v310_v40  ;;  %vm368_vm6 = vcmp.gt.f32.partialorder %v310_v40, 0.0 }
  0xdd   : > { %v1361_v46 = vpop.f32.mrf.mxu0  ;;  %1393 = vmatprep.mubr.msk.f32.mxu1 %vm424_vm1, %v397_v44 }
  0xde   : > { %vm367_vm7 = vcmp.gt.f32.partialorder %v305_v43, 0.0  ;;  %v383_v48 = vmul.f32 0.2, %v305_v43  ;;  %v320_v49 = vadd.f32 %v1361_v46, %v1601_v25  ;;  %1394 = vmatmul.mubr.msk.f32.vlgmr.msra.gmra.mxu1 %vm424_vm1, %v398_v47  ;;  %v400_v55 = vsel %vm368_vm6, %v310_v40, %v384_v45 }
  0xdf   : > { %v314_v50 = vpop.f32.mrf.mxu0  ;;  %1443 = vmatpush3.msra.mxu1 %v918_v28 }
  0xe0   : > { %v315_v51 = vadd.f32 %v1601_v25, %v314_v50  ;;  %v399_v52 = vsel %vm367_vm7, %v305_v43, %v383_v48  ;;  %v386_v53 = vmul.f32 0.2, %v320_v49  ;;  %vm370_vm8 = vcmp.gt.f32.partialorder %v320_v49, 0.0  ;;  %1444 = vmatprep.subr.mxu1 %v917_v29 }
  0xe1   : > { %v1364_v54 = vpop.f32.mrf.mxu0  ;;  %1396 = vmatprep.mubr.msk.f32.mxu1 %vm424_vm1, %v399_v52  ;;  %1445 = vmatpush3.msra.mxu1 %v917_v29 }
  0xe2   : > { %vm369_vm9 = vcmp.gt.f32.partialorder %v315_v51, 0.0  ;;  %v385_v56 = vmul.f32 0.2, %v315_v51  ;;  %v330_v57 = vadd.f32 %v1364_v54, %v1601_v25  ;;  %1397 = vmatmul.mubr.msk.f32.gmra.mxu1 %vm424_vm1, %v400_v55  ;;  %v402_v63 = vsel %vm370_vm8, %v320_v49, %v386_v53  ;;  %1446 = vmatprep.subr.mxu1 %v916_v30 }
  0xe3   : > { %v324_v58 = vpop.f32.mrf.mxu0  ;;  %1447 = vmatpush3.msra.mxu1 %v916_v30 }
  0xe4   : > { %v325_v59 = vadd.f32 %v1601_v25, %v324_v58  ;;  %v401_v60 = vsel %vm369_vm9, %v315_v51, %v385_v56  ;;  %v388_v61 = vmul.f32 0.2, %v330_v57  ;;  %vm372_vm10 = vcmp.gt.f32.partialorder %v330_v57, 0.0 }
  0xe5   : > { %v1367_v62 = vpop.f32.mrf.mxu0  ;;  %1399 = vmatprep.mubr.msk.f32.mxu1 %vm424_vm1, %v401_v60 }
  0xe6   : > { %vm371_vm11 = vcmp.gt.f32.partialorder %v325_v59, 0.0  ;;  %v387_v0 = vmul.f32 0.2, %v325_v59  ;;  %v340_v1 = vadd.f32 %v1367_v62, %v1601_v25  ;;  %1400 = vmatmul.mubr.msk.f32.gmra.mxu1 %vm424_vm1, %v402_v63  ;;  %v404_v7 = vsel %vm372_vm10, %v330_v57, %v388_v61 }
  0xe7   : > { %v334_v2 = vpop.f32.mrf.mxu0 }
  0xe8   : > { %v335_v3 = vadd.f32 %v1601_v25, %v334_v2  ;;  %v403_v4 = vsel %vm371_vm11, %v325_v59, %v387_v0  ;;  %v390_v5 = vmul.f32 0.2, %v340_v1  ;;  %vm374_vm12 = vcmp.gt.f32.partialorder %v340_v1, 0.0 }
  0xe9   : > { %v1370_v6 = vpop.f32.mrf.mxu0  ;;  %1402 = vmatprep.mubr.msk.f32.mxu1 %vm424_vm1, %v403_v4 }
  0xea   : > { %vm373_vm13 = vcmp.gt.f32.partialorder %v335_v3, 0.0  ;;  %v389_v8 = vmul.f32 0.2, %v335_v3  ;;  %v350_v9 = vadd.f32 %v1370_v6, %v1601_v25  ;;  %1403 = vmatmul.mubr.msk.f32.gmra.mxu1 %vm424_vm1, %v404_v7  ;;  %v406_v15 = vsel %vm374_vm12, %v340_v1, %v390_v5 }
  0xeb   : > { %v344_v10 = vpop.f32.mrf.mxu0 }
  0xec   : > { %v345_v11 = vadd.f32 %v1601_v25, %v344_v10  ;;  %v405_v12 = vsel %vm373_vm13, %v335_v3, %v389_v8  ;;  %v392_v13 = vmul.f32 0.2, %v350_v9  ;;  %vm376_vm14 = vcmp.gt.f32.partialorder %v350_v9, 0.0 }
  0xed   : > { %v1373_v14 = vpop.f32.mrf.mxu0  ;;  %1405 = vmatprep.mubr.msk.f32.mxu1 %vm424_vm1, %v405_v12 }
  0xee   : > { %vm375_vm15 = vcmp.gt.f32.partialorder %v345_v11, 0.0  ;;  %v391_v16 = vmul.f32 0.2, %v345_v11  ;;  %v360_v17 = vadd.f32 %v1373_v14, %v1601_v25  ;;  %1406 = vmatmul.mubr.msk.f32.gmra.mxu1 %vm424_vm1, %v406_v15  ;;  %v408_v22 = vsel %vm376_vm14, %v350_v9, %v392_v13 }
  0xef   : > { %v354_v18 = vpop.f32.mrf.mxu0 }
  0xf0   : > { %v355_v19 = vadd.f32 %v1601_v25, %v354_v18  ;;  %v407_v20 = vsel %vm375_vm15, %v345_v11, %v391_v16  ;;  %v394_v21 = vmul.f32 0.2, %v360_v17  ;;  %vm378_vm2 = vcmp.gt.f32.partialorder %v360_v17, 0.0  ;;  %v667_v25 = vld [vmem:[%s1773_s1 + $0x50] sm:$0xff] }
  0xf1   : > { %1408 = vmatprep.mubr.msk.f32.mxu1 %vm424_vm1, %v407_v20  ;;  %1414 = vmatprep.subr.mxu0 %v667_v25 }
  0xf2   : > { %vm377_vm3 = vcmp.gt.f32.partialorder %v355_v19, 0.0  ;;  %v393_v23 = vmul.f32 0.2, %v355_v19  ;;  %1409 = vmatmul.mubr.msk.f32.gmra.mxu1 %vm424_vm1, %v408_v22  ;;  %v410_v26 = vsel %vm378_vm2, %v360_v17, %v394_v21  ;;  %1415 = vmatpush3.msra.mxu0 %v667_v25 }
  0xf3   : > { %1416 = vmatprep.subr.mxu0 %v666_v27 }
  0xf4   : > { %v409_v24 = vsel %vm377_vm3, %v355_v19, %v393_v23  ;;  %1417 = vmatpush3.msra.mxu0 %v666_v27 }
  0xf5   : > { %1411 = vmatprep.mubr.msk.f32.mxu1 %vm424_vm1, %v409_v24 }
  0xf6   : > { %1412 = vmatmul.mubr.msk.f32.gmra.mxu1 %vm424_vm1, %v410_v26  ;;  %vm673_vm1 = vcmask 130048  }
 0x199   : > { %v1392_v32 = vpop.f32.mrf.mxu0 }
 0x19a   : > { %v545_v33 = vadd.f32 %v1392_v32, %v1653_v31 }
 0x19b   : > { %v539_v34 = vpop.f32.mrf.mxu0 }
 0x19c   : > { %v540_v35 = vadd.f32 %v1653_v31, %v539_v34  ;;  %v635_v36 = vmul.f32 0.2, %v545_v33  ;;  %vm619_vm4 = vcmp.gt.f32.partialorder %v545_v33, 0.0 }
 0x19e   : > { %v1395_v37 = vpop.f32.mrf.mxu1  ;;  %vm618_vm5 = vcmp.gt.f32.partialorder %v540_v35, 0.0  ;;  %v634_v38 = vmul.f32 0.2, %v540_v35  ;;  %v651_v43 = vsel %vm619_vm4, %v545_v33, %v635_v36  ;;  %v1693_v33 = vld [vmem:[%s1773_s1 + $0x88] ss:$0 sm:$0xff] }
 0x19f   : > { %v555_v39 = vadd.f32 %v1395_v37, %v1653_v31 }
 0x1a0   : > { %v549_v40 = vpop.f32.mrf.mxu1  ;;  %v650_v42 = vsel %vm618_vm5, %v540_v35, %v634_v38 }
 0x1a1   : > { %v550_v41 = vadd.f32 %v1653_v31, %v549_v40  ;;  %v637_v44 = vmul.f32 0.2, %v555_v39  ;;  %1418 = vmatprep.mubr.msk.f32.mxu0 %vm673_vm1, %v650_v42  ;;  %vm621_vm6 = vcmp.gt.f32.partialorder %v555_v39, 0.0 }
 0x1a2   : > { %v1398_v45 = vpop.f32.mrf.mxu1  ;;  %1419 = vmatmul.mubr.msk.f32.vlgmr.msra.gmra.mxu0 %vm673_vm1, %v651_v43 }
 0x1a3   : > { %vm620_vm7 = vcmp.gt.f32.partialorder %v550_v41, 0.0  ;;  %v636_v46 = vmul.f32 0.2, %v550_v41  ;;  %v565_v47 = vadd.f32 %v1398_v45, %v1653_v31  ;;  %v653_v53 = vsel %vm621_vm6, %v555_v39, %v637_v44 }
 0x1a4   : > { %v559_v48 = vpop.f32.mrf.mxu1 }
 0x1a5   : > { %v560_v49 = vadd.f32 %v1653_v31, %v559_v48  ;;  %v652_v50 = vsel %vm620_vm7, %v550_v41, %v636_v46  ;;  %v639_v51 = vmul.f32 0.2, %v565_v47  ;;  %vm623_vm8 = vcmp.gt.f32.partialorder %v565_v47, 0.0 }
 0x1a6   : > { %v1401_v52 = vpop.f32.mrf.mxu1  ;;  %1421 = vmatprep.mubr.msk.f32.mxu0 %vm673_vm1, %v652_v50 }
 0x1a7   : > { %vm622_vm9 = vcmp.gt.f32.partialorder %v560_v49, 0.0  ;;  %v638_v54 = vmul.f32 0.2, %v560_v49  ;;  %v575_v55 = vadd.f32 %v1401_v52, %v1653_v31  ;;  %1422 = vmatmul.mubr.msk.f32.gmra.mxu0 %vm673_vm1, %v653_v53  ;;  %v655_v61 = vsel %vm623_vm8, %v565_v47, %v639_v51 }
 0x1a8   : > { %v569_v56 = vpop.f32.mrf.mxu1 }
 0x1a9   : > { %v570_v57 = vadd.f32 %v1653_v31, %v569_v56  ;;  %v654_v58 = vsel %vm622_vm9, %v560_v49, %v638_v54  ;;  %v641_v59 = vmul.f32 0.2, %v575_v55  ;;  %vm625_vm10 = vcmp.gt.f32.partialorder %v575_v55, 0.0 }
 0x1aa   : > { %v1404_v60 = vpop.f32.mrf.mxu1  ;;  %1424 = vmatprep.mubr.msk.f32.mxu0 %vm673_vm1, %v654_v58 }
 0x1ab   : > { %vm624_vm11 = vcmp.gt.f32.partialorder %v570_v57, 0.0  ;;  %v640_v62 = vmul.f32 0.2, %v570_v57  ;;  %v585_v63 = vadd.f32 %v1404_v60, %v1653_v31  ;;  %1425 = vmatmul.mubr.msk.f32.gmra.mxu0 %vm673_vm1, %v655_v61  ;;  %v657_v5 = vsel %vm625_vm10, %v575_v55, %v641_v59 }
 0x1ac   : > { %v579_v0 = vpop.f32.mrf.mxu1 }
 0x1ad   : > { %v580_v1 = vadd.f32 %v1653_v31, %v579_v0  ;;  %v656_v2 = vsel %vm624_vm11, %v570_v57, %v640_v62  ;;  %v643_v3 = vmul.f32 0.2, %v585_v63  ;;  %vm627_vm12 = vcmp.gt.f32.partialorder %v585_v63, 0.0 }
 0x1ae   : > { %v1407_v4 = vpop.f32.mrf.mxu1  ;;  %1427 = vmatprep.mubr.msk.f32.mxu0 %vm673_vm1, %v656_v2 }
 0x1af   : > { %vm626_vm13 = vcmp.gt.f32.partialorder %v580_v1, 0.0  ;;  %v642_v6 = vmul.f32 0.2, %v580_v1  ;;  %v595_v7 = vadd.f32 %v1407_v4, %v1653_v31  ;;  %1428 = vmatmul.mubr.msk.f32.gmra.mxu0 %vm673_vm1, %v657_v5  ;;  %v659_v13 = vsel %vm627_vm12, %v585_v63, %v643_v3 }
 0x1b0   : > { %v589_v8 = vpop.f32.mrf.mxu1 }
 0x1b1   : > { %v590_v9 = vadd.f32 %v1653_v31, %v589_v8  ;;  %v658_v10 = vsel %vm626_vm13, %v580_v1, %v642_v6  ;;  %v645_v11 = vmul.f32 0.2, %v595_v7  ;;  %vm629_vm14 = vcmp.gt.f32.partialorder %v595_v7, 0.0 }
 0x1b2   : > { %v1410_v12 = vpop.f32.mrf.mxu1  ;;  %1430 = vmatprep.mubr.msk.f32.mxu0 %vm673_vm1, %v658_v10 }
 0x1b3   : > { %vm628_vm15 = vcmp.gt.f32.partialorder %v590_v9, 0.0  ;;  %v644_v14 = vmul.f32 0.2, %v590_v9  ;;  %v605_v15 = vadd.f32 %v1410_v12, %v1653_v31  ;;  %1431 = vmatmul.mubr.msk.f32.gmra.mxu0 %vm673_vm1, %v659_v13  ;;  %v661_v21 = vsel %vm629_vm14, %v595_v7, %v645_v11 }
 0x1b4   : > { %v599_v16 = vpop.f32.mrf.mxu1 }
 0x1b5   : > { %v600_v17 = vadd.f32 %v1653_v31, %v599_v16  ;;  %v660_v18 = vsel %vm628_vm15, %v590_v9, %v644_v14  ;;  %v647_v19 = vmul.f32 0.2, %v605_v15  ;;  %vm631_vm2 = vcmp.gt.f32.partialorder %v605_v15, 0.0 }
 0x1b6   : > { %v1413_v20 = vpop.f32.mrf.mxu1  ;;  %1433 = vmatprep.mubr.msk.f32.mxu0 %vm673_vm1, %v660_v18 }
 0x1b7   : > { %vm630_vm3 = vcmp.gt.f32.partialorder %v600_v17, 0.0  ;;  %v646_v22 = vmul.f32 0.2, %v600_v17  ;;  %v615_v23 = vadd.f32 %v1413_v20, %v1653_v31  ;;  %1434 = vmatmul.mubr.msk.f32.gmra.mxu0 %vm673_vm1, %v661_v21  ;;  %v663_v28 = vsel %vm631_vm2, %v605_v15, %v647_v19 }
 0x1b8   : > { %v609_v24 = vpop.f32.mrf.mxu1 }
 0x1b9   : > { %v610_v26 = vadd.f32 %v1653_v31, %v609_v24  ;;  %v662_v25 = vsel %vm630_vm3, %v600_v17, %v646_v22  ;;  %v649_v27 = vmul.f32 0.2, %v615_v23  ;;  %vm633_vm4 = vcmp.gt.f32.partialorder %v615_v23, 0.0  ;;  %v915_v31 = vld [vmem:[%s1773_s1 + $0x58] sm:$0xff] }
 0x1ba   : > { %1436 = vmatprep.mubr.msk.f32.mxu0 %vm673_vm1, %v662_v25  ;;  %1448 = vmatprep.subr.mxu1 %v915_v31 }
 0x1bb   : > { %vm632_vm5 = vcmp.gt.f32.partialorder %v610_v26, 0.0  ;;  %v648_v29 = vmul.f32 0.2, %v610_v26  ;;  %1437 = vmatmul.mubr.msk.f32.gmra.mxu0 %vm673_vm1, %v663_v28  ;;  %v665_v32 = vsel %vm633_vm4, %v615_v23, %v649_v27  ;;  %1449 = vmatpush3.msra.mxu1 %v915_v31 }
 0x1bd   : > { %v664_v30 = vsel %vm632_vm5, %v610_v26, %v648_v29 }
 0x1be   : > { %1439 = vmatprep.mubr.msk.f32.mxu0 %vm673_vm1, %v664_v30 }
 0x1bf   : > { %1440 = vmatmul.mubr.msk.f32.gmra.mxu0 %vm673_vm1, %v665_v32  ;;  %vm924_vm1 = vcmask 261120  }
 0x262   : > { %v1420_v34 = vpop.f32.mrf.mxu0 }
 0x263   : > { %v794_v35 = vadd.f32 %v1420_v34, %v1693_v33 }
 0x264   : > { %v788_v36 = vpop.f32.mrf.mxu0 }
 0x265   : > { %v789_v37 = vadd.f32 %v1693_v33, %v788_v36  ;;  %v884_v38 = vmul.f32 0.2, %v794_v35  ;;  %vm868_vm6 = vcmp.gt.f32.partialorder %v794_v35, 0.0 }
 0x267   : > { %v1423_v39 = vpop.f32.mrf.mxu0  ;;  %vm867_vm7 = vcmp.gt.f32.partialorder %v789_v37, 0.0  ;;  %v883_v40 = vmul.f32 0.2, %v789_v37  ;;  %v900_v45 = vsel %vm868_vm6, %v794_v35, %v884_v38 }
 0x268   : > { %v804_v41 = vadd.f32 %v1423_v39, %v1693_v33 }
 0x269   : > { %v798_v42 = vpop.f32.mrf.mxu0  ;;  %v899_v44 = vsel %vm867_vm7, %v789_v37, %v883_v40 }
 0x26a   : > { %v799_v43 = vadd.f32 %v1693_v33, %v798_v42  ;;  %v886_v46 = vmul.f32 0.2, %v804_v41  ;;  %1450 = vmatprep.mubr.msk.f32.mxu1 %vm924_vm1, %v899_v44  ;;  %vm870_vm8 = vcmp.gt.f32.partialorder %v804_v41, 0.0 }
 0x26b   : > { %v1426_v47 = vpop.f32.mrf.mxu0  ;;  %1451 = vmatmul.mubr.msk.f32.vlgmr.msra.gmra.mxu1 %vm924_vm1, %v900_v45 }
 0x26c   : > { %vm869_vm9 = vcmp.gt.f32.partialorder %v799_v43, 0.0  ;;  %v885_v48 = vmul.f32 0.2, %v799_v43  ;;  %v814_v49 = vadd.f32 %v1426_v47, %v1693_v33  ;;  %v902_v55 = vsel %vm870_vm8, %v804_v41, %v886_v46 }
 0x26d   : > { %v808_v50 = vpop.f32.mrf.mxu0 }
 0x26e   : > { %v809_v51 = vadd.f32 %v1693_v33, %v808_v50  ;;  %v901_v52 = vsel %vm869_vm9, %v799_v43, %v885_v48  ;;  %v888_v53 = vmul.f32 0.2, %v814_v49  ;;  %vm872_vm10 = vcmp.gt.f32.partialorder %v814_v49, 0.0 }
 0x26f   : > { %v1429_v54 = vpop.f32.mrf.mxu0  ;;  %1453 = vmatprep.mubr.msk.f32.mxu1 %vm924_vm1, %v901_v52 }
 0x270   : > { %vm871_vm11 = vcmp.gt.f32.partialorder %v809_v51, 0.0  ;;  %v887_v56 = vmul.f32 0.2, %v809_v51  ;;  %v824_v57 = vadd.f32 %v1429_v54, %v1693_v33  ;;  %1454 = vmatmul.mubr.msk.f32.gmra.mxu1 %vm924_vm1, %v902_v55  ;;  %v904_v63 = vsel %vm872_vm10, %v814_v49, %v888_v53 }
 0x271   : > { %v818_v58 = vpop.f32.mrf.mxu0 }
 0x272   : > { %v819_v59 = vadd.f32 %v1693_v33, %v818_v58  ;;  %v903_v60 = vsel %vm871_vm11, %v809_v51, %v887_v56  ;;  %v890_v61 = vmul.f32 0.2, %v824_v57  ;;  %vm874_vm12 = vcmp.gt.f32.partialorder %v824_v57, 0.0 }
 0x273   : > { %v1432_v62 = vpop.f32.mrf.mxu0  ;;  %1456 = vmatprep.mubr.msk.f32.mxu1 %vm924_vm1, %v903_v60 }
 0x274   : > { %vm873_vm13 = vcmp.gt.f32.partialorder %v819_v59, 0.0  ;;  %v889_v0 = vmul.f32 0.2, %v819_v59  ;;  %v834_v1 = vadd.f32 %v1432_v62, %v1693_v33  ;;  %1457 = vmatmul.mubr.msk.f32.gmra.mxu1 %vm924_vm1, %v904_v63  ;;  %v906_v7 = vsel %vm874_vm12, %v824_v57, %v890_v61 }
 0x275   : > { %v828_v2 = vpop.f32.mrf.mxu0 }
 0x276   : > { %v829_v3 = vadd.f32 %v1693_v33, %v828_v2  ;;  %v905_v4 = vsel %vm873_vm13, %v819_v59, %v889_v0  ;;  %v892_v5 = vmul.f32 0.2, %v834_v1  ;;  %vm876_vm14 = vcmp.gt.f32.partialorder %v834_v1, 0.0 }
 0x277   : > { %v1435_v6 = vpop.f32.mrf.mxu0  ;;  %1459 = vmatprep.mubr.msk.f32.mxu1 %vm924_vm1, %v905_v4 }
 0x278   : > { %vm875_vm15 = vcmp.gt.f32.partialorder %v829_v3, 0.0  ;;  %v891_v8 = vmul.f32 0.2, %v829_v3  ;;  %v844_v9 = vadd.f32 %v1435_v6, %v1693_v33  ;;  %1460 = vmatmul.mubr.msk.f32.gmra.mxu1 %vm924_vm1, %v906_v7  ;;  %v908_v15 = vsel %vm876_vm14, %v834_v1, %v892_v5 }
 0x279   : > { %v838_v10 = vpop.f32.mrf.mxu0 }
 0x27a   : > { %v839_v11 = vadd.f32 %v1693_v33, %v838_v10  ;;  %v907_v12 = vsel %vm875_vm15, %v829_v3, %v891_v8  ;;  %v894_v13 = vmul.f32 0.2, %v844_v9  ;;  %vm878_vm2 = vcmp.gt.f32.partialorder %v844_v9, 0.0 }
 0x27b   : > { %v1438_v14 = vpop.f32.mrf.mxu0  ;;  %1462 = vmatprep.mubr.msk.f32.mxu1 %vm924_vm1, %v907_v12 }
 0x27c   : > { %vm877_vm3 = vcmp.gt.f32.partialorder %v839_v11, 0.0  ;;  %v893_v16 = vmul.f32 0.2, %v839_v11  ;;  %v854_v17 = vadd.f32 %v1438_v14, %v1693_v33  ;;  %1463 = vmatmul.mubr.msk.f32.gmra.mxu1 %vm924_vm1, %v908_v15  ;;  %v910_v23 = vsel %vm878_vm2, %v844_v9, %v894_v13 }
 0x27d   : > { %v848_v18 = vpop.f32.mrf.mxu0 }
 0x27e   : > { %v849_v19 = vadd.f32 %v1693_v33, %v848_v18  ;;  %v909_v20 = vsel %vm877_vm3, %v839_v11, %v893_v16  ;;  %v896_v21 = vmul.f32 0.2, %v854_v17  ;;  %vm880_vm4 = vcmp.gt.f32.partialorder %v854_v17, 0.0 }
 0x27f   : > { %v1441_v22 = vpop.f32.mrf.mxu0  ;;  %1465 = vmatprep.mubr.msk.f32.mxu1 %vm924_vm1, %v909_v20 }
 0x280   : > { %vm879_vm5 = vcmp.gt.f32.partialorder %v849_v19, 0.0  ;;  %v895_v24 = vmul.f32 0.2, %v849_v19  ;;  %v864_v26 = vadd.f32 %v1441_v22, %v1693_v33  ;;  %1466 = vmatmul.mubr.msk.f32.gmra.mxu1 %vm924_vm1, %v910_v23  ;;  %v912_v30 = vsel %vm880_vm4, %v854_v17, %v896_v21 }
 0x281   : > { %v858_v25 = vpop.f32.mrf.mxu0 }
 0x282   : > { %v859_v27 = vadd.f32 %v1693_v33, %v858_v25  ;;  %v911_v28 = vsel %vm879_vm5, %v849_v19, %v895_v24  ;;  %v898_v29 = vmul.f32 0.2, %v864_v26  ;;  %vm882_vm6 = vcmp.gt.f32.partialorder %v864_v26, 0.0  ;;  %v1250_v33 = vld [vmem:[%s1773_s1 + $0x90] ss:$0 sm:$0xff] }
 0x283   : > { %1468 = vmatprep.mubr.msk.f32.mxu1 %vm924_vm1, %v911_v28 }
 0x284   : > { %vm881_vm7 = vcmp.gt.f32.partialorder %v859_v27, 0.0  ;;  %v897_v32 = vmul.f32 0.2, %v859_v27  ;;  %1469 = vmatmul.mubr.msk.f32.gmra.mxu1 %vm924_vm1, %v912_v30  ;;  %v914_v34 = vsel %vm882_vm6, %v864_v26, %v898_v29 }
 0x286   : > { %v913_v31 = vsel %vm881_vm7, %v859_v27, %v897_v32 }
 0x287   : > { %1471 = vmatprep.mubr.msk.f32.mxu1 %vm924_vm1, %v913_v31 }
 0x288   : > { %1472 = vmatmul.mubr.msk.f32.gmra.mxu1 %vm924_vm1, %v914_v34 }
 0x32b   : > { %v1452_v35 = vpop.f32.mrf.mxu1 }
 0x32c   : > { %v1045_v36 = vadd.f32 %v1452_v35, %v1250_v33 }
 0x32d   : > { %v1039_v37 = vpop.f32.mrf.mxu1 }
 0x32e   : > { %1119 = vst.msk [vmem:[%s1735_s3 + $0x8] sm:$0xff] %vm169_vm0, %v1045_v36  ;;  %v1040_v38 = vadd.f32 %v1250_v33, %v1039_v37 }
 0x330   : > { %v1455_v39 = vpop.f32.mrf.mxu1  ;;  %1118 = vst.msk [vmem:[%s1735_s3] sm:$0xff] %vm169_vm0, %v1040_v38 }
 0x331   : > { %v1055_v40 = vadd.f32 %v1455_v39, %v1250_v33 }
 0x332   : > { %v1049_v41 = vpop.f32.mrf.mxu1 }
 0x333   : > { %1121 = vst.msk [vmem:[%s1735_s3 + $0x18] sm:$0xff] %vm169_vm0, %v1055_v40  ;;  %v1050_v42 = vadd.f32 %v1250_v33, %v1049_v41 }
 0x334   : > { %v1458_v43 = vpop.f32.mrf.mxu1 }
 0x335   : > { %1120 = vst.msk [vmem:[%s1735_s3 + $0x10] sm:$0xff] %vm169_vm0, %v1050_v42  ;;  %v1065_v44 = vadd.f32 %v1458_v43, %v1250_v33 }
 0x336   : > { %v1059_v45 = vpop.f32.mrf.mxu1 }
 0x337   : > { %1123 = vst.msk [vmem:[%s1735_s3 + $0x28] sm:$0xff] %vm169_vm0, %v1065_v44  ;;  %v1060_v46 = vadd.f32 %v1250_v33, %v1059_v45 }
 0x338   : > { %v1461_v47 = vpop.f32.mrf.mxu1 }
 0x339   : > { %1122 = vst.msk [vmem:[%s1735_s3 + $0x20] sm:$0xff] %vm169_vm0, %v1060_v46  ;;  %v1075_v48 = vadd.f32 %v1461_v47, %v1250_v33 }
 0x33a   : > { %v1069_v49 = vpop.f32.mrf.mxu1 }
 0x33b   : > { %1125 = vst.msk [vmem:[%s1735_s3 + $0x38] sm:$0xff] %vm169_vm0, %v1075_v48  ;;  %v1070_v50 = vadd.f32 %v1250_v33, %v1069_v49 }
 0x33c   : > { %v1464_v51 = vpop.f32.mrf.mxu1 }
 0x33d   : > { %1124 = vst.msk [vmem:[%s1735_s3 + $0x30] sm:$0xff] %vm169_vm0, %v1070_v50  ;;  %v1085_v52 = vadd.f32 %v1464_v51, %v1250_v33 }
 0x33e   : > { %v1079_v53 = vpop.f32.mrf.mxu1 }
 0x33f   : > { %1127 = vst.msk [vmem:[%s1735_s3 + $0x48] sm:$0xff] %vm169_vm0, %v1085_v52  ;;  %v1080_v54 = vadd.f32 %v1250_v33, %v1079_v53 }
 0x340   : > { %v1467_v55 = vpop.f32.mrf.mxu1 }
 0x341   : > { %1126 = vst.msk [vmem:[%s1735_s3 + $0x40] sm:$0xff] %vm169_vm0, %v1080_v54  ;;  %v1095_v56 = vadd.f32 %v1467_v55, %v1250_v33 }
 0x342   : > { %v1089_v57 = vpop.f32.mrf.mxu1 }
 0x343   : > { %1129 = vst.msk [vmem:[%s1735_s3 + $0x58] sm:$0xff] %vm169_vm0, %v1095_v56  ;;  %v1090_v58 = vadd.f32 %v1250_v33, %v1089_v57 }
 0x344   : > { %v1470_v59 = vpop.f32.mrf.mxu1 }
 0x345   : > { %1128 = vst.msk [vmem:[%s1735_s3 + $0x50] sm:$0xff] %vm169_vm0, %v1090_v58  ;;  %v1105_v60 = vadd.f32 %v1470_v59, %v1250_v33 }
 0x346   : > { %v1099_v61 = vpop.f32.mrf.mxu1 }
 0x347   : > { %1131 = vst.msk [vmem:[%s1735_s3 + $0x68] sm:$0xff] %vm169_vm0, %v1105_v60  ;;  %v1100_v62 = vadd.f32 %v1250_v33, %v1099_v61 }
 0x348   : > { %v1473_v63 = vpop.f32.mrf.mxu1 }
 0x349   : > { %1130 = vst.msk [vmem:[%s1735_s3 + $0x60] sm:$0xff] %vm169_vm0, %v1100_v62  ;;  %v1115_v0 = vadd.f32 %v1473_v63, %v1250_v33 }
 0x34a   : > { %v1109_v1 = vpop.f32.mrf.mxu1 }
 0x34b   : > { %1133 = vst.msk [vmem:[%s1735_s3 + $0x78] sm:$0xff] %vm169_vm0, %v1115_v0  ;;  %v1110_v2 = vadd.f32 %v1250_v33, %v1109_v1 }
 0x34d   : > { %1132 = vst.msk [vmem:[%s1735_s3 + $0x70] sm:$0xff] %vm169_vm0, %v1110_v2 }
 0x34e PF: > { %s12_s9 = sadd.s32 1, %s1504_s9  }
 0x34f   : > { %p9_p4 = scmp.ge.s32.totalorder %s12_s9, 4  }
 0x351   :  { %11 = sbr.rel (!%p9_p4) target bundleno = 1 (0x1), region = 58 }

</bundles_post_ra>
